<compile_context>
chip_gen: v5e
topology: v5e:2x2
jax: 0.10.0
libtpu: 0.0.40
codegen_flags: <defaults>
</compile_context>

<pallas_src>
import functools

import jax
import jax.numpy as jnp
from jax.experimental import pallas as pl
from jax.experimental.pallas import tpu as pltpu

_LANES = 128


# ----------------------------- shared conv tile ------------------------------
def _conv_tile(x_ref, xh_ref, w_ref, *, K, l_tile):
    """Conv1d output tile (C_out, l_tile) in f32 from the current L-tile + halo."""
    xm = x_ref[0]                                    # (C_in, l_tile)
    if K > 1:
        xh = xh_ref[0]                               # (C_in, 128) halo block
        xw = jnp.concatenate([xm, xh[:, : K - 1]], axis=-1)   # (C_in, l_tile+K-1)
    else:
        xw = xm
    # K accumulating dots instead of one (K*C_in)-stacked matmul (review item #7).
    # TODO(synk): cast xw / w to bf16 (keep f32 accumulation) when ~1e-2
    # tolerance is acceptable -- halves x HBM traffic and MXU passes.
    y = jnp.dot(w_ref[0], xw[:, :l_tile], preferred_element_type=jnp.float32)
    for k in range(1, K):
        y = y + jnp.dot(w_ref[k], xw[:, k : k + l_tile],
                        preferred_element_type=jnp.float32)
    return y


# ----------------------------- pass 1: stats only ----------------------------
def _conv_stats_kernel(x_ref, xh_ref, w_ref, sum_ref, ssq_ref, *, K, l_tile, L):
    # x_ref  : (1, C_in, l_tile)   current L-tile of the padded input
    # xh_ref : (1, C_in, 128)      next 128 columns (conv halo)
    # w_ref  : (K, C_out, C_in)    conv weight, k-major
    # sum_ref, ssq_ref : (1, C_out, 128)  per-n, lane-partial accumulators
    j = pl.program_id(1)

    @pl.when(j == 0)
    def _():
        sum_ref[...] = jnp.zeros_like(sum_ref)
        ssq_ref[...] = jnp.zeros_like(ssq_ref)

    y = _conv_tile(x_ref, xh_ref, w_ref, K=K, l_tile=l_tile)   # (C_out, l_tile) f32

    def _accumulate(yv):
        c0 = yv[:, :_LANES]
        s1, s2 = c0, c0 * c0
        for i in range(1, l_tile // _LANES):       # lane-partial sums (VPU only)
            c = yv[:, i * _LANES : (i + 1) * _LANES]
            s1 = s1 + c
            s2 = s2 + c * c
        sum_ref[0] += s1
        ssq_ref[0] += s2

    if L % l_tile != 0:
        last = pl.num_programs(1) - 1

        @pl.when(j != last)
        def _():
            _accumulate(y)

        @pl.when(j == last)      # only the ragged tile pays for the L-mask
        def _():
            col = j * l_tile + jax.lax.broadcasted_iota(jnp.int32, y.shape, 1)
            _accumulate(jnp.where(col < L, y, 0.0))
    else:
        _accumulate(y)


# ---------------------- pass 2: conv recompute + BN + ReLU --------------------
def _conv_bn_relu_kernel(x_ref, xh_ref, w_ref, scale_ref, shift_ref, o_ref, *,
                         K, l_tile):
    y = _conv_tile(x_ref, xh_ref, w_ref, K=K, l_tile=l_tile)   # (C_out, l_tile)
    o_ref[0] = jnp.maximum(y * scale_ref[...] + shift_ref[...], 0.0).astype(o_ref.dtype)


# ----------------------------------- wrapper ---------------------------------
def _vmem_capacity_bytes():
    try:
        cap = getattr(pltpu.get_tpu_info(), "vmem_capacity_bytes", None)
        if cap:
            return int(cap)
    except Exception:
        pass
    return 64 << 20      # conservative fallback: v7x-class (64 MiB) VMEM


def shortcut_layer(x, weight, bias, gamma, beta, *, kernel_size, eps=1e-5,
                   l_tile=None):
    """relu(batchnorm1d(conv1d(same_pad(x)))) with training-mode batch statistics.

    x: (N, C_in, L) f32; weight: (C_out, C_in, K); bias/gamma/beta: (C_out,).
    """
    del bias  # Conv bias cancels exactly when the batch mean is subtracted in BN.
    N, C_in, L = x.shape
    C_out = weight.shape[0]
    K = int(kernel_size)
    assert 1 <= K <= _LANES, "kernel_size must be in [1, 128]"

    cap = _vmem_capacity_bytes()

    def _footprint(lt):
        # Rough f32 bytes: double-buffered streamed blocks + in-kernel temps.
        return 4 * (2 * C_in * (lt + _LANES)          # x tile + halo (x2 buffers)
                    + 2 * C_out * lt                  # streamed output tile
                    + 4 * C_out * _LANES              # stat accumulators
                    + 2 * K * C_out * C_in            # resident weights
                    + K * C_in * lt + 2 * C_out * lt)  # shifted slices / y temps

    # l_tile: always a multiple of 128 (lane-dense); largest that fits ~30% of
    # this chip's VMEM (v5e/v6e get 1024-2048, v7x backs off automatically).
    if l_tile is None:
        Lr = pl.cdiv(L, _LANES) * _LANES
        budget = int(0.30 * cap)
        l_tile = _LANES
        for cand in (256, 512, 1024, 2048):
            if cand <= Lr and _footprint(cand) <= budget:
                l_tile = cand
    else:
        l_tile = max(_LANES, pl.cdiv(int(l_tile), _LANES) * _LANES)

    grid_l = pl.cdiv(L, l_tile)
    halo_ratio = l_tile // _LANES

    # One zero-pad covers the conv "same" halo, L-tile alignment, and keeps the
    # 128-wide halo block after the last tile fully in bounds.
    left = (K - 1) // 2
    x_len = grid_l * l_tile + _LANES
    x_pad = jnp.pad(x.astype(jnp.float32),
                    ((0, 0), (0, 0), (left, x_len - left - L)))
    w_t = jnp.transpose(weight.astype(jnp.float32), (2, 0, 1))   # (K, C_out, C_in)

    est = _footprint(l_tile)
    vmem_limit = int(min(max(int(1.5 * est) + (8 << 20), 32 << 20),
                         int(0.75 * cap)))

    x_main_spec = pl.BlockSpec((1, C_in, l_tile), lambda n, j: (n, 0, j))
    x_halo_spec = pl.BlockSpec((1, C_in, _LANES),
                               lambda n, j: (n, 0, (j + 1) * halo_ratio))
    w_spec = pl.BlockSpec((K, C_out, C_in), lambda n, j: (0, 0, 0))

    # ---- pass 1: per-(n, lane) partial conv statistics (no y written to HBM) ----
    stats_shape = jax.ShapeDtypeStruct((N, C_out, _LANES), jnp.float32)
    ssum, ssq = pl.pallas_call(
        functools.partial(_conv_stats_kernel, K=K, l_tile=l_tile, L=L),
        grid=(N, grid_l),
        in_specs=[x_main_spec, x_halo_spec, w_spec],
        out_specs=(
            pl.BlockSpec((1, C_out, _LANES), lambda n, j: (n, 0, 0)),
            pl.BlockSpec((1, C_out, _LANES), lambda n, j: (n, 0, 0)),
        ),
        out_shape=(stats_shape, stats_shape),
        compiler_params=pltpu.CompilerParams(
            dimension_semantics=("parallel", "arbitrary"),   # megacore over N
            vmem_limit_bytes=vmem_limit,
        ),
    )(x_pad, x_pad, w_t)

    # ---- tiny (C_out,) stats finalization in plain JAX ----
    # NOTE: E[y^2]-E[y]^2 in f32 can lose precision if |mean| >> std with huge
    # N*L; acceptable for BN-after-conv activations (clamped at 0 below).
    cnt = jnp.float32(N * L)
    mean = jnp.sum(ssum, axis=(0, 2)) / cnt
    var = jnp.maximum(jnp.sum(ssq, axis=(0, 2)) / cnt - mean * mean, 0.0)
    inv = jax.lax.rsqrt(var + eps)
    scale = (gamma * inv).reshape(C_out, 1).astype(jnp.float32)
    shift = (beta - mean * gamma * inv).reshape(C_out, 1).astype(jnp.float32)

    # ---- pass 2: recompute conv tile, fused BN affine + ReLU ----
    # TODO(synk): for L << 128 fold several batch rows onto the lane axis so the
    # output stores become lane-dense instead of masked.
    out = pl.pallas_call(
        functools.partial(_conv_bn_relu_kernel, K=K, l_tile=l_tile),
        grid=(N, grid_l),
        in_specs=[x_main_spec, x_halo_spec, w_spec,
                  pl.BlockSpec((C_out, 1), lambda n, j: (0, 0)),
                  pl.BlockSpec((C_out, 1), lambda n, j: (0, 0))],
        out_specs=pl.BlockSpec((1, C_out, l_tile), lambda n, j: (n, 0, j)),
        out_shape=jax.ShapeDtypeStruct((N, C_out, L), jnp.float32),
        compiler_params=pltpu.CompilerParams(
            dimension_semantics=("parallel", "parallel"),
            vmem_limit_bytes=vmem_limit,
        ),
    )(x_pad, x_pad, w_t, scale, shift)
    return out


# ----------------------------------- reference --------------------------------
def _reference(x, weight, bias, gamma, beta, *, kernel_size, eps=1e-5):
    """Pure-JAX reference matching the PyTorch module's forward (training-mode BN)."""
    K = kernel_size
    left, right = (K - 1) // 2, K // 2
    x_pad = jnp.pad(x, ((0, 0), (0, 0), (left, right)))
    y = jax.lax.conv_general_dilated(
        x_pad, weight, window_strides=(1,), padding="VALID",
        dimension_numbers=("NCH", "OIH", "NCH"),
    ) + bias[None, :, None]
    mean = jnp.mean(y, axis=(0, 2), keepdims=True)
    var = jnp.mean((y - mean) ** 2, axis=(0, 2), keepdims=True)
    y = (y - mean) / jnp.sqrt(var + eps)
    y = y * gamma[None, :, None] + beta[None, :, None]
    return jnp.maximum(y, 0.0)


if __name__ == "__main__":
    # Small shapes consistent with a Conv1d shortcut: N=2, C_in=4, C_out=8, L=16, K=3
    N, C_IN, C_OUT, L, K = 2, 4, 8, 16, 3

    key = jax.random.PRNGKey(0)
    kx, kw, kb, kg, kbeta = jax.random.split(key, 5)

    x = jax.random.normal(kx, (N, C_IN, L), dtype=jnp.float32)
    weight = jax.random.normal(kw, (C_OUT, C_IN, K), dtype=jnp.float32) * 0.1
    bias = jax.random.normal(kb, (C_OUT,), dtype=jnp.float32) * 0.1
    gamma = 1.0 + 0.1 * jax.random.normal(kg, (C_OUT,), dtype=jnp.float32)
    beta = 0.1 * jax.random.normal(kbeta, (C_OUT,), dtype=jnp.float32)

    out = shortcut_layer(x, weight, bias, gamma, beta, kernel_size=K)
    out = jax.block_until_ready(out)

    ref = _reference(x, weight, bias, gamma, beta, kernel_size=K)
    assert out.shape == (N, C_OUT, L), out.shape
    assert jnp.allclose(out, ref, atol=1e-3, rtol=1e-3), (
        float(jnp.max(jnp.abs(out - ref)))
    )

    print("KERNEL_OK")
</pallas_src>

<mosaic_0001>
module attributes {stable_mosaic.version = 11 : i64} {
  func.func @_conv_stats_kernel(%arg0: i32, %arg1: i32, %arg2: memref<1x4x128xf32, #tpu.memory_space<vmem>>, %arg3: memref<1x4x128xf32, #tpu.memory_space<vmem>>, %arg4: memref<3x8x4xf32, #tpu.memory_space<vmem>>, %arg5: memref<1x8x128xf32, #tpu.memory_space<vmem>>, %arg6: memref<1x8x128xf32, #tpu.memory_space<vmem>>) attributes {dimension_semantics = [#tpu.dimension_semantics<parallel>, #tpu.dimension_semantics<arbitrary>], iteration_bounds = array<i64: 2, 1>, scalar_prefetch = 0 : i64, scratch_operands = 0 : i64, tpu.core_type = #tpu.core_type<tc>, window_params = [{transform_indices = @transform_0, window_bounds = array<i64: 1, 4, 128>}, {transform_indices = @transform_1, window_bounds = array<i64: 1, 4, 128>}, {pipeline_mode = #tpu.pipeline_mode<synchronous>, transform_indices = @transform_2, window_bounds = array<i64: 3, 8, 4>}, {transform_indices = @transform_3, window_bounds = array<i64: 1, 8, 128>}, {transform_indices = @transform_4, window_bounds = array<i64: 1, 8, 128>}]} {
    %c0_i32 = arith.constant 0 : i32
    %0 = arith.cmpi eq, %arg1, %c0_i32 : i32
    %1 = arith.extui %0 : i1 to i32
    %c0_i32_0 = arith.constant 0 : i32
    %2 = arith.cmpi ne, %1, %c0_i32_0 : i32
    scf.if %2 {
      %cst_19 = arith.constant 0.000000e+00 : f32
      %29 = vector.broadcast %cst_19 : f32 to vector<1x8x128xf32>
      %c0_20 = arith.constant 0 : index
      %c0_21 = arith.constant 0 : index
      %c0_22 = arith.constant 0 : index
      %30 = vector.load %arg5[%c0_20, %c0_21, %c0_22] : memref<1x8x128xf32, #tpu.memory_space<vmem>>, vector<1x8x128xf32>
      tpu.vector_store %arg5[%c0_20, %c0_21, %c0_22], %29 {strides = array<i32>} : memref<1x8x128xf32, #tpu.memory_space<vmem>>, vector<1x8x128xf32>,
      %cst_23 = arith.constant 0.000000e+00 : f32
      %31 = vector.broadcast %cst_23 : f32 to vector<1x8x128xf32>
      %c0_24 = arith.constant 0 : index
      %c0_25 = arith.constant 0 : index
      %c0_26 = arith.constant 0 : index
      %32 = vector.load %arg6[%c0_24, %c0_25, %c0_26] : memref<1x8x128xf32, #tpu.memory_space<vmem>>, vector<1x8x128xf32>
      tpu.vector_store %arg6[%c0_24, %c0_25, %c0_26], %31 {strides = array<i32>} : memref<1x8x128xf32, #tpu.memory_space<vmem>>, vector<1x8x128xf32>,
    } else {
    }
    %c0 = arith.constant 0 : index
    %c0_1 = arith.constant 0 : index
    %c0_2 = arith.constant 0 : index
    %3 = vector.load %arg2[%c0, %c0_1, %c0_2] : memref<1x4x128xf32, #tpu.memory_space<vmem>>, vector<1x4x128xf32>
    %4 = vector.shape_cast %3 : vector<1x4x128xf32> to vector<4x128xf32>
    %c0_3 = arith.constant 0 : index
    %c0_4 = arith.constant 0 : index
    %c0_5 = arith.constant 0 : index
    %5 = vector.load %arg3[%c0_3, %c0_4, %c0_5] : memref<1x4x128xf32, #tpu.memory_space<vmem>>, vector<1x4x128xf32>
    %6 = vector.shape_cast %5 : vector<1x4x128xf32> to vector<4x128xf32>
    %7 = vector.extract_strided_slice %6 {offsets = [0, 0], sizes = [4, 2], strides = [1, 1]} : vector<4x128xf32> to vector<4x2xf32>
    %8 = tpu.concatenate %4, %7 in 1 : vector<4x128xf32>, vector<4x2xf32> -> vector<4x130xf32>
    %c0_6 = arith.constant 0 : index
    %c0_7 = arith.constant 0 : index
    %c0_8 = arith.constant 0 : index
    %9 = vector.load %arg4[%c0_6, %c0_7, %c0_8] : memref<3x8x4xf32, #tpu.memory_space<vmem>>, vector<1x8x4xf32>
    %10 = vector.shape_cast %9 : vector<1x8x4xf32> to vector<8x4xf32>
    %11 = vector.extract_strided_slice %8 {offsets = [0, 0], sizes = [4, 128], strides = [1, 1]} : vector<4x130xf32> to vector<4x128xf32>
    %cst = arith.constant dense<0.000000e+00> : vector<8x128xf32>
    %12 = tpu.matmul %10, %11, %cst {dimension_numbers = #tpu.dot_dimension_numbers<[1], [0], [0], [1], [0, 0, 1, 1], [], []>} : vector<8x4xf32>, vector<4x128xf32>, vector<8x128xf32> -> vector<8x128xf32>
    %c1 = arith.constant 1 : index
    %c0_9 = arith.constant 0 : index
    %c0_10 = arith.constant 0 : index
    %13 = vector.load %arg4[%c1, %c0_9, %c0_10] : memref<3x8x4xf32, #tpu.memory_space<vmem>>, vector<1x8x4xf32>
    %14 = vector.shape_cast %13 : vector<1x8x4xf32> to vector<8x4xf32>
    %15 = vector.extract_strided_slice %8 {offsets = [0, 1], sizes = [4, 128], strides = [1, 1]} : vector<4x130xf32> to vector<4x128xf32>
    %cst_11 = arith.constant dense<0.000000e+00> : vector<8x128xf32>
    %16 = tpu.matmul %14, %15, %cst_11 {dimension_numbers = #tpu.dot_dimension_numbers<[1], [0], [0], [1], [0, 0, 1, 1], [], []>} : vector<8x4xf32>, vector<4x128xf32>, vector<8x128xf32> -> vector<8x128xf32>
    %17 = arith.addf %12, %16 : vector<8x128xf32>
    %c2 = arith.constant 2 : index
    %c0_12 = arith.constant 0 : index
    %c0_13 = arith.constant 0 : index
    %18 = vector.load %arg4[%c2, %c0_12, %c0_13] : memref<3x8x4xf32, #tpu.memory_space<vmem>>, vector<1x8x4xf32>
    %19 = vector.shape_cast %18 : vector<1x8x4xf32> to vector<8x4xf32>
    %20 = vector.extract_strided_slice %8 {offsets = [0, 2], sizes = [4, 128], strides = [1, 1]} : vector<4x130xf32> to vector<4x128xf32>
    %cst_14 = arith.constant dense<0.000000e+00> : vector<8x128xf32>
    %21 = tpu.matmul %19, %20, %cst_14 {dimension_numbers = #tpu.dot_dimension_numbers<[1], [0], [0], [1], [0, 0, 1, 1], [], []>} : vector<8x4xf32>, vector<4x128xf32>, vector<8x128xf32> -> vector<8x128xf32>
    %22 = arith.addf %17, %21 : vector<8x128xf32>
    %c0_i32_15 = arith.constant 0 : i32
    %23 = arith.cmpi ne, %arg1, %c0_i32_15 : i32
    %24 = arith.extui %23 : i1 to i32
    %c0_i32_16 = arith.constant 0 : i32
    %25 = arith.cmpi ne, %24, %c0_i32_16 : i32
    scf.if %25 {
      %29 = arith.mulf %22, %22 : vector<8x128xf32>
      %c0_19 = arith.constant 0 : index
      %c0_20 = arith.constant 0 : index
      %c0_21 = arith.constant 0 : index
      %30 = vector.load %arg5[%c0_19, %c0_20, %c0_21] : memref<1x8x128xf32, #tpu.memory_space<vmem>>, vector<1x8x128xf32>
      %31 = vector.shape_cast %30 : vector<1x8x128xf32> to vector<8x128xf32>
      %32 = arith.addf %31, %22 : vector<8x128xf32>
      %c0_22 = arith.constant 0 : index
      %c0_23 = arith.constant 0 : index
      %c0_24 = arith.constant 0 : index
      %33 = vector.load %arg5[%c0_22, %c0_23, %c0_24] : memref<1x8x128xf32, #tpu.memory_space<vmem>>, vector<1x8x128xf32>
      %34 = vector.shape_cast %33 : vector<1x8x128xf32> to vector<8x128xf32>
      %35 = vector.shape_cast %32 : vector<8x128xf32> to vector<1x8x128xf32>
      tpu.vector_store %arg5[%c0_22, %c0_23, %c0_24], %35 {strides = array<i32>} : memref<1x8x128xf32, #tpu.memory_space<vmem>>, vector<1x8x128xf32>,
      %c0_25 = arith.constant 0 : index
      %c0_26 = arith.constant 0 : index
      %c0_27 = arith.constant 0 : index
      %36 = vector.load %arg6[%c0_25, %c0_26, %c0_27] : memref<1x8x128xf32, #tpu.memory_space<vmem>>, vector<1x8x128xf32>
      %37 = vector.shape_cast %36 : vector<1x8x128xf32> to vector<8x128xf32>
      %38 = arith.addf %37, %29 : vector<8x128xf32>
      %c0_28 = arith.constant 0 : index
      %c0_29 = arith.constant 0 : index
      %c0_30 = arith.constant 0 : index
      %39 = vector.load %arg6[%c0_28, %c0_29, %c0_30] : memref<1x8x128xf32, #tpu.memory_space<vmem>>, vector<1x8x128xf32>
      %40 = vector.shape_cast %39 : vector<1x8x128xf32> to vector<8x128xf32>
      %41 = vector.shape_cast %38 : vector<8x128xf32> to vector<1x8x128xf32>
      tpu.vector_store %arg6[%c0_28, %c0_29, %c0_30], %41 {strides = array<i32>} : memref<1x8x128xf32, #tpu.memory_space<vmem>>, vector<1x8x128xf32>,
    } else {
    }
    %c0_i32_17 = arith.constant 0 : i32
    %26 = arith.cmpi eq, %arg1, %c0_i32_17 : i32
    %27 = arith.extui %26 : i1 to i32
    %c0_i32_18 = arith.constant 0 : i32
    %28 = arith.cmpi ne, %27, %c0_i32_18 : i32
    scf.if %28 {
      %c128_i32 = arith.constant 128 : i32
      %29 = arith.muli %arg1, %c128_i32 : i32
      %30 = tpu.iota {dimensions = array<i32: 1>} : vector<8x128xi32>
      %31 = vector.broadcast %29 : i32 to vector<8x128xi32>
      %32 = arith.addi %31, %30 : vector<8x128xi32>
      %c16_i32 = arith.constant 16 : i32
      %33 = vector.broadcast %c16_i32 : i32 to vector<8x128xi32>
      %34 = arith.cmpi slt, %32, %33 : vector<8x128xi32>
      %cst_19 = arith.constant 0.000000e+00 : f32
      %35 = vector.broadcast %cst_19 : f32 to vector<8x128xf32>
      %36 = arith.select %34, %22, %35 : vector<8x128xi1>, vector<8x128xf32>
      %37 = arith.mulf %36, %36 : vector<8x128xf32>
      %c0_20 = arith.constant 0 : index
      %c0_21 = arith.constant 0 : index
      %c0_22 = arith.constant 0 : index
      %38 = vector.load %arg5[%c0_20, %c0_21, %c0_22] : memref<1x8x128xf32, #tpu.memory_space<vmem>>, vector<1x8x128xf32>
      %39 = vector.shape_cast %38 : vector<1x8x128xf32> to vector<8x128xf32>
      %40 = arith.addf %39, %36 : vector<8x128xf32>
      %c0_23 = arith.constant 0 : index
      %c0_24 = arith.constant 0 : index
      %c0_25 = arith.constant 0 : index
      %41 = vector.load %arg5[%c0_23, %c0_24, %c0_25] : memref<1x8x128xf32, #tpu.memory_space<vmem>>, vector<1x8x128xf32>
      %42 = vector.shape_cast %41 : vector<1x8x128xf32> to vector<8x128xf32>
      %43 = vector.shape_cast %40 : vector<8x128xf32> to vector<1x8x128xf32>
      tpu.vector_store %arg5[%c0_23, %c0_24, %c0_25], %43 {strides = array<i32>} : memref<1x8x128xf32, #tpu.memory_space<vmem>>, vector<1x8x128xf32>,
      %c0_26 = arith.constant 0 : index
      %c0_27 = arith.constant 0 : index
      %c0_28 = arith.constant 0 : index
      %44 = vector.load %arg6[%c0_26, %c0_27, %c0_28] : memref<1x8x128xf32, #tpu.memory_space<vmem>>, vector<1x8x128xf32>
      %45 = vector.shape_cast %44 : vector<1x8x128xf32> to vector<8x128xf32>
      %46 = arith.addf %45, %37 : vector<8x128xf32>
      %c0_29 = arith.constant 0 : index
      %c0_30 = arith.constant 0 : index
      %c0_31 = arith.constant 0 : index
      %47 = vector.load %arg6[%c0_29, %c0_30, %c0_31] : memref<1x8x128xf32, #tpu.memory_space<vmem>>, vector<1x8x128xf32>
      %48 = vector.shape_cast %47 : vector<1x8x128xf32> to vector<8x128xf32>
      %49 = vector.shape_cast %46 : vector<8x128xf32> to vector<1x8x128xf32>
      tpu.vector_store %arg6[%c0_29, %c0_30, %c0_31], %49 {strides = array<i32>} : memref<1x8x128xf32, #tpu.memory_space<vmem>>, vector<1x8x128xf32>,
    } else {
    }
    return
  }
  func.func @transform_0(%arg0: i32, %arg1: i32) -> (i32, i32, i32) {
    %c0_i32 = arith.constant 0 : i32
    %c0_i32_0 = arith.constant 0 : i32
    return %arg0, %c0_i32, %arg1 : i32, i32, i32
  }
  func.func @transform_1(%arg0: i32, %arg1: i32) -> (i32, i32, i32) {
    %c1_i32 = arith.constant 1 : i32
    %0 = arith.addi %arg1, %c1_i32 : i32
    %c1_i32_0 = arith.constant 1 : i32
    %1 = arith.muli %0, %c1_i32_0 : i32
    %c0_i32 = arith.constant 0 : i32
    %c0_i32_1 = arith.constant 0 : i32
    return %arg0, %c0_i32, %1 : i32, i32, i32
  }
  func.func @transform_2(%arg0: i32, %arg1: i32) -> (i32, i32, i32) {
    %c0_i32 = arith.constant 0 : i32
    %c0_i32_0 = arith.constant 0 : i32
    %c0_i32_1 = arith.constant 0 : i32
    %c0_i32_2 = arith.constant 0 : i32
    return %c0_i32, %c0_i32_0, %c0_i32_1 : i32, i32, i32
  }
  func.func @transform_3(%arg0: i32, %arg1: i32) -> (i32, i32, i32) {
    %c0_i32 = arith.constant 0 : i32
    %c0_i32_0 = arith.constant 0 : i32
    %c0_i32_1 = arith.constant 0 : i32
    return %arg0, %c0_i32, %c0_i32_0 : i32, i32, i32
  }
  func.func @transform_4(%arg0: i32, %arg1: i32) -> (i32, i32, i32) {
    %c0_i32 = arith.constant 0 : i32
    %c0_i32_0 = arith.constant 0 : i32
    %c0_i32_1 = arith.constant 0 : i32
    return %arg0, %c0_i32, %c0_i32_0 : i32, i32, i32
  }
}

</mosaic_0001>

<bundles_post_ra>
// kernel: tpu_custom_call.1
= control target key start
LH: loop header
LB: loop body
LE: loop exit
PB: predicated region body
PF: predicated region fallthrough
CT: control target
= control target key end

     0   :  { %10 = vsyncpa [#allocation3], 0  ;;  %s931_s0 = inlined_call_operand.vmem [shape: f32[2,4,256], index: 0, kind: input, shape index: {}]   ;;  %s932_s1 = inlined_call_operand.vmem [shape: f32[2,4,256], index: 1, kind: input, shape index: {}]   ;;  %s933_s2 = inlined_call_operand.vmem [shape: f32[3,8,4], index: 2, kind: input, shape index: {}]   ;;  %s934_s3 = inlined_call_operand.hbm [shape: f32[2,8,128], index: 3, kind: output, shape index: {0}]   ;;  %s935_s4 = inlined_call_operand.hbm [shape: f32[2,8,128], index: 4, kind: output, shape index: {1}]  }
   0x1   :  { %12 = vsyncpa [#allocation3 + $0x1], 0 }
   0x2   :  { %13 = vsyncpa [#allocation5], 0 }
   0x3   :  { %15 = vsyncpa [#allocation5 + $0x1], 0  ;;  %s791_s15 = smov 0   ;;  %s793_s16 = smov 0  }
   0x4   :  { %s795_s17 = smov 0   ;;  %s797_s18 = smov 0  }
   0x5   :  { %s799_s19 = smov 0   ;;  %s801_s20 = smov 0  }
   0x6 LB: > { %s560_s21 = sadd.s32 4294967295, %s762_s20   ;;  %s561_s22 = sadd.s32 4294967294, %s762_s20   ;;  %s762_s20 = sphi %s801_s20, %s21_s20   ;;  %s758_s19 = sphi %s799_s19, %s942_s19   ;;  %s754_s18 = sphi %s797_s18, %s941_s18   ;;  %s750_s17 = sphi %s795_s17, %s940_s17   ;;  %s746_s16 = sphi %s793_s16, %s939_s16   ;;  %s742_s15 = sphi %s791_s15, %s938_s15  }
   0x7   : > { %s33_s23 = sadd.s32 1, %s758_s19  ;;  %s119_s24 = sadd.s32 1, %s750_s17 }
   0x8   : > { %p35_p0 = scmp.ge.s32.totalorder %s33_s23, 2  ;;  %p129_p1 = scmp.ne.s32.totalorder %s750_s17, %s746_s16 }
   0x9   : > { %p130_p2 = scmp.eq.s32.totalorder %s560_s21, 1  ;;  %p135_p3 = scmp.ne.s32.totalorder %s746_s16, %s742_s15 }
   0xa   : > { %s944_s23 = smov (%p35_p0, %s33_s23), 0  ;;  %p136_p5 = scmp.eq.s32.totalorder %s561_s22, 1 }
   0xb   : > { %p831_p4 = por %p130_p2, %p129_p1  ;;  %s116_s26 = ssub.s32 %s758_s19, %s944_s23 }
   0xc   : > { %p564_p6 = scmp.ge.s32.totalorder %s762_s20, 1  ;;  %p117_p7 = scmp.eq.s32.totalorder %s116_s26, 0 }
   0xd   : > { %p838_p8 = por %p136_p5, %p135_p3  ;;  %p207_p9 = scmp.lt.s32.totalorder %s762_s20, 3 }
   0xe   : > { %s844_s28 = scalar_select %p117_p7, %s750_s17, %s119_s24  }
   0xf   : > { %p208_p10 = pnand %p564_p6, %p207_p9 }
  0x10   : > { %p250_p11 = scmp.lt.s32.totalorder (!%p208_p10), %s754_s18, 1  ;;  %s764_s9 = smov (!%p208_p10), 127  }
  0x11   : > { %211 = sbr.rel (%p208_p10) target bundleno = 302 (0x12e), region = 32  ;;  %s765_s10 = smov (!%p208_p10), 126  }
  0x12   : > { %s581_s6 = sshll.u32 (!%p208_p10), %s754_s18, 3 }
  0x13   : > { %s431_s12 = scalar_lea.hbm (!%p208_p10), %s935_s4, %s581_s6 }
  0x14   : > { %s435_s24 = sshll.u32 (!%p208_p10), %s431_s12, 4  ;;  %s882_s24 = int_to_ptr.hbm [resolvable:$true] %s435_s24 }
  0x16   : > { %s251_s29 = scalar_select %p250_p11, %s754_s18, 1  ;;  %vm291_vm0 = vcmask 1043456   ;;  %vm287_vm1 = vcmask 31744   ;;  %v276_v2 = vld [vmem:[%s933_s2] sm:$0xff]  ;;  %vm285_vm2 = vcmask 1039360   ;;  %vm345_vm3 = vcmask 1031168  }
  0x17   : > { %v576_v7 = vld [vmem:[%s933_s2 + $0x10] sm:$0xff]  ;;  %v571_v8 = vld [vmem:[%s933_s2 + $0x8] sm:$0xff]  ;;  %v388_v11 = vlaneseq }
  0x18   : > { %s585_s30 = sshll.u32 %s251_s29, 3 }
  0x19   : > { %s257_s7 = scalar_lea.vmem %s931_s0, %s585_s30  ;;  %s587_s8 = sadd.s32 4, %s585_s30  ;;  %v389_v14 = vand.u32 127, %v388_v11 }
  0x1a   : > { %v274_v0 = vld [vmem:[%s257_s7] sm:$0xf]  ;;  %s266_s13 = scalar_lea.vmem %s932_s1, %s587_s8  ;;  %s870_s30 = sand.u32 1, %s746_s16  }
  0x1b   : > { %281 = vrot.lane.b32.xlu1 %v274_v0, %s764_s9  ;;  %341 = vrot.lane.b32.xlu0 %v274_v0, %s765_s10  ;;  %v275_v1 = vld [vmem:[%s266_s13] sm:$0xf]  ;;  %s565_s5 = sshll.u32 %s870_s30, 3  ;;  %vm392_vm4 = vcmp.lt.s32.totalorder %v389_v14, 16  ;;  %s402_s26 = scalar_lea.sflag [#allocation3], %s870_s30 }
  0x1c   : > { %574 = vmatpush.msk.msra.mxu1 %vm291_vm0, %v274_v0  ;;  %s242_s13 = scalar_lea.vmem [#allocation2], %s565_s5  ;;  %s249_s18 = scalar_lea.vmem [#allocation4], %s565_s5 }
  0x1d   : > { %575 = vmatmul.msk.f32.vlgmr.msra.gmra.mxu1 %vm287_vm1, %v276_v2  ;;  %s419_s14 = sshll.u32 %s242_s13, 4  ;;  %s433_s22 = sshll.u32 %s249_s18, 4  ;;  %s420_s14 = int_to_ptr.vmem [resolvable:$true] %s419_s14  ;;  %s880_s22 = int_to_ptr.vmem [resolvable:$true] %s433_s22 }
  0x1e   : > { %s672_s8 = scalar_lea.hbm %s934_s3, 16 }
  0x23   : > { %283 = vrot.lane.b32.xlu1 %v275_v1, %s764_s9  ;;  %343 = vrot.lane.b32.xlu0 %v275_v1, %s765_s10  ;;  %s417_s9 = scalar_lea.hbm %s934_s3, %s581_s6 }
  0x24   : > { %s421_s21 = sshll.u32 %s417_s9, 4  ;;  %s422_s21 = int_to_ptr.hbm [resolvable:$true] %s421_s21 }
  0x25   : > { %s666_s29 = sshra.s32 %s422_s21, 4  ;;  %s667_s29 = int_to_ptr.hbm [resolvable:$true] %s666_s29 }
  0x26   : > { %s668_s6 = scalar_lea.hbm %s667_s29, 8  ;;  %p673_p1 = scmp.lt.s32.totalorder %s667_s29, %s934_s3 }
  0x27   : > { %p669_p12 = scmp.ne.s32.totalorder %s667_s29, %s668_s6  ;;  %p674_p2 = scmp.lt.s32.totalorder %s672_s8, %s668_s6 }
  0x29   : > { %p670_p13 = pnand %p669_p12, %p831_p4  ;;  %p675_p3 = por %p674_p2, %p673_p1 }
  0x2b   : > { %p671_p0 = pneg %p670_p13 }
  0x2d   : > { %p676_p5 = pnand %p675_p3, %p671_p0 }
  0x8d   : > { %v282_v3 = vpop.permute.xlu1 %281  ;;  %v342_v4 = vpop.permute.xlu0 %341 }
  0x95   : > { %v284_v5 = vpop.permute.xlu1 %283  ;;  %v344_v6 = vpop.permute.xlu0 %343 }
  0x96   : > { %v286_v9 = vsel %vm285_vm2, %v282_v3, %v284_v5  ;;  %v346_v10 = vsel %vm345_vm3, %v342_v4, %v344_v6 }
  0x97   : > { %572 = vmatpush.msk.msra.mxu0 %vm291_vm0, %v286_v9  ;;  %577 = vmatpush.msk.msra.mxu2 %vm291_vm0, %v346_v10 }
  0x98   : > { %578 = vmatmul.msk.f32.vlgmr.msra.gmra.mxu2 %vm287_vm1, %v576_v7  ;;  %573 = vmatmul.msk.f32.vlgmr.msra.gmra.mxu0 %vm287_vm1, %v571_v8 }
  0x9a   : > { %v336_v13 = vpop.f32.mrf.mxu1 }
 0x115   : > { %v311_v12 = vpop.f32.mrf.mxu0 }
 0x116   : > { %v337_v15 = vadd.f32 %v336_v13, %v311_v12 }
 0x11b   : > { %v369_v16 = vpop.f32.mrf.mxu2 }
 0x11c   : > { %v372_v17 = vadd.f32 %v369_v16, %v337_v15 }
 0x11e   : > { %v393_v18 = vsel %vm392_vm4, %v372_v17, 0.0 }
 0x11f   : > { %v394_v19 = vmul.f32 %v393_v18, %v393_v18  ;;  %397 = vst [vmem:[%s242_s13] sm:$0xff] %v393_v18 }
 0x120   : > { %679 = shalt.err (!%p676_p5)
}
 0x121   : > { %589 = dma.vmem_to_hbm [thread:$0]  (%p831_p4), %s420_s14, 128, %s422_s21, %s402_s26   ;;  %400 = vst [vmem:[%s249_s18] sm:$0xff] %v394_v19 }
 0x122   : > { %s407_s11 = scalar_lea.sflag [#allocation5], %s870_s30  ;;  %s694_s12 = sshra.s32 %s882_s24, 4  ;;  %s695_s12 = int_to_ptr.hbm [resolvable:$true] %s694_s12 }
 0x123   : > { %s696_s13 = scalar_lea.hbm %s695_s12, 8  ;;  %s700_s7 = scalar_lea.hbm %s935_s4, 16 }
 0x124   : > { %p697_p6 = scmp.ne.s32.totalorder %s695_s12, %s696_s13  ;;  %p701_p10 = scmp.lt.s32.totalorder %s695_s12, %s935_s4 }
 0x125   : > { %p702_p11 = scmp.lt.s32.totalorder %s700_s7, %s696_s13 }
 0x126   : > { %p698_p7 = pnand %p697_p6, %p831_p4 }
 0x127   : > { %p703_p12 = por %p702_p11, %p701_p10 }
 0x128   : > { %p699_p9 = pneg %p698_p7 }
 0x12a   : > { %p704_p13 = pnand %p703_p12, %p699_p9 }
 0x12c   : > { %707 = shalt.err (!%p704_p13)
}
 0x12d   : > { %590 = dma.vmem_to_hbm [thread:$0]  (%p831_p4), %s880_s22, 128, %s882_s24, %s407_s11  }
 0x12e PF: > { %p600_p0 = scmp.ge.s32.totalorder %s762_s20, 2  ;;  %s447_s30 = sand.u32 1, %s742_s15  }
 0x12f   : > { %s448_s14 = scalar_lea.sflag [#allocation3], %s447_s30 }
 0x130   : > { %p594_p1 = pnand %p600_p0, %p838_p8 }
 0x132   : > { %p595_p2 = pneg %p594_p1 }
 0x134   : > { %733 = dma.done.wait (%p595_p2), %s448_s14, 128  }
 0x135   : > { %735 = vsyncadd (%p595_p2), %s448_s14, 4294967168  ;;  %s458_s21 = scalar_lea.sflag [#allocation5], %s447_s30 }
 0x136   : > { %737 = dma.done.wait (%p595_p2), %s458_s21, 128  }
 0x137   : > { %739 = vsyncadd (%p595_p2), %s458_s21, 4294967168  ;;  %s21_s20 = sadd.s32 1, %s762_s20   ;;  %s938_s15 = smov %s746_s16 }
 0x138   : > { %p18_p3 = scmp.ge.s32.totalorder %s21_s20, 4   ;;  %s939_s16 = smov %s750_s17 }
 0x139   : > { %s940_s17 = smov %s844_s28  ;;  %s941_s18 = smov %s758_s19 }
 0x13a   : > { %s942_s19 = smov %s944_s23  ;;  %20 = sbr.rel (!%p18_p3) target bundleno = 6 (0x6), region = 101 }
 0x13f   :  { %464 = vsyncpa [#allocation3], 1 }
 0x140   :  { %466 = vsyncpa [#allocation3 + $0x1], 1 }
 0x141   :  { %467 = vsyncpa [#allocation5], 1 }
 0x142   :  { %469 = vsyncpa [#allocation5 + $0x1], 1 }

</bundles_post_ra>
